<compile_context>
chip_gen: v7x
topology: tpu7x:2x2x1
jax: 0.10.0
libtpu: 0.0.40
codegen_flags: <defaults>
</compile_context>

<pallas_src>
import jax
import jax.numpy as jnp
from jax.experimental import pallas as pl
from jax.experimental.pallas import tpu as pltpu


def residual_block_kernel(x_ref, w1_ref, b1_ref, w2_ref, b2_ref, o_ref):
    """x_ref/o_ref: (1, C, L) f32; w*_ref: (C, 3C) bf16; b*_ref: (C, 1) f32."""
    x = x_ref[0]                               # (C, L) f32
    C, L = x.shape

    def stacked_taps(v):
        # [v[l-1]; v[l]; v[l+1]] stacked along channels, zero-padded at edges.
        z = jnp.zeros((C, 1), dtype=v.dtype)
        vm1 = jnp.concatenate([z, v[:, : L - 1]], axis=1)   # v[l-1]
        vp1 = jnp.concatenate([v[:, 1:], z], axis=1)        # v[l+1]
        return jnp.concatenate([vm1, v, vp1], axis=0).astype(jnp.bfloat16)

    # ---- conv1: single fused (C, 3C) @ (3C, L) MXU matmul, f32 accumulation.
    h = jnp.dot(w1_ref[...], stacked_taps(x),
                preferred_element_type=jnp.float32) + b1_ref[...]

    # ---- Swish: h * sigmoid(h). exp goes to the EUP; plain divide kept for
    #      exactness/portability (pl.reciprocal(..., approx=True) is the
    #      hardware-EUP variant if looser accuracy is acceptable).
    h = h * (1.0 / (1.0 + jnp.exp(-h)))

    # ---- conv2 (same fused single-matmul form).
    y = jnp.dot(w2_ref[...], stacked_taps(h),
                preferred_element_type=jnp.float32) + b2_ref[...]

    # ---- residual add + ReLU (f32).
    o_ref[0] = jnp.maximum(y + x, 0.0)


def _stack_conv_weights(w):
    # (Co, Ci, 3) -> (Co, 3*Ci); column blocks [k=0 | k=1 | k=2] match the
    # activation stacking [v[l-1]; v[l]; v[l+1]].
    return jnp.concatenate([w[:, :, 0], w[:, :, 1], w[:, :, 2]], axis=1)


def residual_block(x, w1, b1, w2, b2):
    """x: (N, C, L); w1: (Co, Ci, 3); b1: (Co,); w2: (Co, Co, 3); b2: (Co,)."""
    N, C, L = x.shape
    Co = w1.shape[0]
    assert Co == C, "residual add requires in_channels == out_channels"

    w1_s = _stack_conv_weights(w1).astype(jnp.bfloat16)   # (C, 3C)
    w2_s = _stack_conv_weights(w2).astype(jnp.bfloat16)   # (C, 3C)
    b1_c = b1.reshape(C, 1).astype(jnp.float32)
    b2_c = b2.reshape(C, 1).astype(jnp.float32)
    x_f = x.astype(jnp.float32)

    flops = 2 * 2 * C * (3 * C) * L * N          # two convs, fused taps
    transcendentals = N * C * L                   # one exp per Swish element
    bytes_accessed = (2 * N * C * L * 4           # x in + out (f32)
                      + (w1_s.size + w2_s.size) * 2
                      + (b1_c.size + b2_c.size) * 4)

    return pl.pallas_call(
        residual_block_kernel,
        out_shape=jax.ShapeDtypeStruct((N, C, L), jnp.float32),
        grid_spec=pltpu.PrefetchScalarGridSpec(
            num_scalar_prefetch=0,
            grid=(N,),
            in_specs=[
                pl.BlockSpec((1, C, L), lambda n: (n, 0, 0)),
                pl.BlockSpec((C, 3 * C), lambda n: (0, 0)),
                pl.BlockSpec((C, 1), lambda n: (0, 0)),
                pl.BlockSpec((C, 3 * C), lambda n: (0, 0)),
                pl.BlockSpec((C, 1), lambda n: (0, 0)),
            ],
            out_specs=pl.BlockSpec((1, C, L), lambda n: (n, 0, 0)),
        ),
        compiler_params=pltpu.CompilerParams(
            dimension_semantics=("parallel",),
            vmem_limit_bytes=32 * 1024 * 1024,
        ),
        cost_estimate=pl.CostEstimate(
            flops=flops,
            transcendentals=transcendentals,
            bytes_accessed=bytes_accessed,
        ),
    )(x_f, w1_s, b1_c, w2_s, b2_c)


# ---------------- pure-JAX reference for correctness check ----------------
def _conv1d_ref(x, w, b):
    N, C, L = x.shape
    xp = jnp.pad(x, ((0, 0), (0, 0), (1, 1)))
    out = sum(jnp.einsum('oc,ncl->nol', w[:, :, k], xp[:, :, k:k + L])
              for k in range(3))
    return out + b[None, :, None]


def _residual_block_ref(x, w1, b1, w2, b2):
    h = _conv1d_ref(x, w1, b1)
    h = h * jax.nn.sigmoid(h)
    y = _conv1d_ref(h, w2, b2) + x
    return jnp.maximum(y, 0.0)


if __name__ == "__main__":
    key = jax.random.PRNGKey(0)
    N, C, L = 2, 4, 16           # batch=2, in_channels=out_channels=4, seq=16
    k_x, k_w1, k_b1, k_w2, k_b2 = jax.random.split(key, 5)

    x = jax.random.normal(k_x, (N, C, L), dtype=jnp.float32)
    # Deterministic parameter init (shapes match nn.Conv1d(C, C, 3)).
    w1 = 0.1 * jax.random.normal(k_w1, (C, C, 3), dtype=jnp.float32)
    b1 = 0.1 * jax.random.normal(k_b1, (C,), dtype=jnp.float32)
    w2 = 0.1 * jax.random.normal(k_w2, (C, C, 3), dtype=jnp.float32)
    b2 = 0.1 * jax.random.normal(k_b2, (C,), dtype=jnp.float32)

    out = residual_block(x, w1, b1, w2, b2)
    out = jax.block_until_ready(out)

    ref = _residual_block_ref(x, w1, b1, w2, b2)
    assert out.shape == (N, C, L)
    # Tolerance loosened because matmul operands are rounded to bf16
    # (accumulation stays f32).
    assert jnp.allclose(out, ref, atol=2e-2, rtol=2e-2), "mismatch vs reference"

    print("KERNEL_OK")
</pallas_src>

<mosaic_0001>
module attributes {stable_mosaic.version = 11 : i64} {
  func.func @residual_block_kernel(%arg0: i32, %arg1: memref<1x4x16xf32, #tpu.memory_space<vmem>>, %arg2: memref<4x12xbf16, #tpu.memory_space<vmem>>, %arg3: memref<4x1xf32, #tpu.memory_space<vmem>>, %arg4: memref<4x12xbf16, #tpu.memory_space<vmem>>, %arg5: memref<4x1xf32, #tpu.memory_space<vmem>>, %arg6: memref<1x4x16xf32, #tpu.memory_space<vmem>>) attributes {dimension_semantics = [#tpu.dimension_semantics<parallel>], iteration_bounds = array<i64: 2>, scalar_prefetch = 0 : i64, scratch_operands = 0 : i64, tpu.core_type = #tpu.core_type<tc>, window_params = [{transform_indices = @transform_0, window_bounds = array<i64: 1, 4, 16>}, {pipeline_mode = #tpu.pipeline_mode<synchronous>, transform_indices = @transform_1, window_bounds = array<i64: 4, 12>}, {pipeline_mode = #tpu.pipeline_mode<synchronous>, transform_indices = @transform_2, window_bounds = array<i64: 4, 1>}, {pipeline_mode = #tpu.pipeline_mode<synchronous>, transform_indices = @transform_3, window_bounds = array<i64: 4, 12>}, {pipeline_mode = #tpu.pipeline_mode<synchronous>, transform_indices = @transform_4, window_bounds = array<i64: 4, 1>}, {transform_indices = @transform_5, window_bounds = array<i64: 1, 4, 16>}]} {
    %c0 = arith.constant 0 : index
    %c0_0 = arith.constant 0 : index
    %c0_1 = arith.constant 0 : index
    %0 = vector.load %arg1[%c0, %c0_0, %c0_1] : memref<1x4x16xf32, #tpu.memory_space<vmem>>, vector<1x4x16xf32>
    %1 = vector.shape_cast %0 : vector<1x4x16xf32> to vector<4x16xf32>
    %c0_2 = arith.constant 0 : index
    %c0_3 = arith.constant 0 : index
    %2 = vector.load %arg2[%c0_2, %c0_3] : memref<4x12xbf16, #tpu.memory_space<vmem>>, vector<4x12xbf16>
    %cst = arith.constant 0.000000e+00 : f32
    %3 = vector.broadcast %cst : f32 to vector<4x1xf32>
    %4 = vector.extract_strided_slice %1 {offsets = [0, 0], sizes = [4, 15], strides = [1, 1]} : vector<4x16xf32> to vector<4x15xf32>
    %5 = tpu.concatenate %3, %4 in 1 : vector<4x1xf32>, vector<4x15xf32> -> vector<4x16xf32>
    %6 = vector.extract_strided_slice %1 {offsets = [0, 1], sizes = [4, 15], strides = [1, 1]} : vector<4x16xf32> to vector<4x15xf32>
    %7 = tpu.concatenate %6, %3 in 1 : vector<4x15xf32>, vector<4x1xf32> -> vector<4x16xf32>
    %8 = tpu.concatenate %5, %1, %7 in 0 : vector<4x16xf32>, vector<4x16xf32>, vector<4x16xf32> -> vector<12x16xf32>
    %9 = arith.truncf %8 : vector<12x16xf32> to vector<12x16xbf16>
    %cst_4 = arith.constant dense<0.000000e+00> : vector<4x16xf32>
    %10 = tpu.matmul %2, %9, %cst_4 {dimension_numbers = #tpu.dot_dimension_numbers<[1], [0], [0], [1], [0, 0, 1, 1], [], []>} : vector<4x12xbf16>, vector<12x16xbf16>, vector<4x16xf32> -> vector<4x16xf32>
    %c0_5 = arith.constant 0 : index
    %c0_6 = arith.constant 0 : index
    %11 = vector.load %arg3[%c0_5, %c0_6] : memref<4x1xf32, #tpu.memory_space<vmem>>, vector<4x1xf32>
    %12 = vector.broadcast %11 : vector<4x1xf32> to vector<4x16xf32>
    %13 = arith.addf %10, %12 : vector<4x16xf32>
    %cst_7 = arith.constant 0.000000e+00 : f32
    %14 = vector.broadcast %cst_7 : f32 to vector<4x16xf32>
    %15 = arith.subf %14, %13 : vector<4x16xf32>
    %16 = math.exp %15 : vector<4x16xf32>
    %cst_8 = arith.constant 1.000000e+00 : f32
    %17 = vector.broadcast %cst_8 : f32 to vector<4x16xf32>
    %18 = arith.addf %17, %16 : vector<4x16xf32>
    %cst_9 = arith.constant 1.000000e+00 : f32
    %19 = vector.broadcast %cst_9 : f32 to vector<4x16xf32>
    %20 = arith.divf %19, %18 : vector<4x16xf32>
    %21 = arith.mulf %13, %20 : vector<4x16xf32>
    %c0_10 = arith.constant 0 : index
    %c0_11 = arith.constant 0 : index
    %22 = vector.load %arg4[%c0_10, %c0_11] : memref<4x12xbf16, #tpu.memory_space<vmem>>, vector<4x12xbf16>
    %cst_12 = arith.constant 0.000000e+00 : f32
    %23 = vector.broadcast %cst_12 : f32 to vector<4x1xf32>
    %24 = vector.extract_strided_slice %21 {offsets = [0, 0], sizes = [4, 15], strides = [1, 1]} : vector<4x16xf32> to vector<4x15xf32>
    %25 = tpu.concatenate %23, %24 in 1 : vector<4x1xf32>, vector<4x15xf32> -> vector<4x16xf32>
    %26 = vector.extract_strided_slice %21 {offsets = [0, 1], sizes = [4, 15], strides = [1, 1]} : vector<4x16xf32> to vector<4x15xf32>
    %27 = tpu.concatenate %26, %23 in 1 : vector<4x15xf32>, vector<4x1xf32> -> vector<4x16xf32>
    %28 = tpu.concatenate %25, %21, %27 in 0 : vector<4x16xf32>, vector<4x16xf32>, vector<4x16xf32> -> vector<12x16xf32>
    %29 = arith.truncf %28 : vector<12x16xf32> to vector<12x16xbf16>
    %cst_13 = arith.constant dense<0.000000e+00> : vector<4x16xf32>
    %30 = tpu.matmul %22, %29, %cst_13 {dimension_numbers = #tpu.dot_dimension_numbers<[1], [0], [0], [1], [0, 0, 1, 1], [], []>} : vector<4x12xbf16>, vector<12x16xbf16>, vector<4x16xf32> -> vector<4x16xf32>
    %c0_14 = arith.constant 0 : index
    %c0_15 = arith.constant 0 : index
    %31 = vector.load %arg5[%c0_14, %c0_15] : memref<4x1xf32, #tpu.memory_space<vmem>>, vector<4x1xf32>
    %32 = vector.broadcast %31 : vector<4x1xf32> to vector<4x16xf32>
    %33 = arith.addf %30, %32 : vector<4x16xf32>
    %34 = arith.addf %33, %1 : vector<4x16xf32>
    %cst_16 = arith.constant 0.000000e+00 : f32
    %35 = vector.broadcast %cst_16 : f32 to vector<4x16xf32>
    %36 = arith.maximumf %34, %35 : vector<4x16xf32>
    %c0_17 = arith.constant 0 : index
    %c0_18 = arith.constant 0 : index
    %c0_19 = arith.constant 0 : index
    %37 = vector.load %arg6[%c0_17, %c0_18, %c0_19] : memref<1x4x16xf32, #tpu.memory_space<vmem>>, vector<1x4x16xf32>
    %38 = vector.shape_cast %37 : vector<1x4x16xf32> to vector<4x16xf32>
    %39 = vector.shape_cast %36 : vector<4x16xf32> to vector<1x4x16xf32>
    tpu.vector_store %arg6[%c0_17, %c0_18, %c0_19], %39 {strides = array<i32>} : memref<1x4x16xf32, #tpu.memory_space<vmem>>, vector<1x4x16xf32>,
    return
  }
  func.func @transform_0(%arg0: i32) -> (i32, i32, i32) {
    %c0_i32 = arith.constant 0 : i32
    %c0_i32_0 = arith.constant 0 : i32
    %c0_i32_1 = arith.constant 0 : i32
    return %arg0, %c0_i32, %c0_i32_0 : i32, i32, i32
  }
  func.func @transform_1(%arg0: i32) -> (i32, i32) {
    %c0_i32 = arith.constant 0 : i32
    %c0_i32_0 = arith.constant 0 : i32
    %c0_i32_1 = arith.constant 0 : i32
    return %c0_i32, %c0_i32_0 : i32, i32
  }
  func.func @transform_2(%arg0: i32) -> (i32, i32) {
    %c0_i32 = arith.constant 0 : i32
    %c0_i32_0 = arith.constant 0 : i32
    %c0_i32_1 = arith.constant 0 : i32
    return %c0_i32, %c0_i32_0 : i32, i32
  }
  func.func @transform_3(%arg0: i32) -> (i32, i32) {
    %c0_i32 = arith.constant 0 : i32
    %c0_i32_0 = arith.constant 0 : i32
    %c0_i32_1 = arith.constant 0 : i32
    return %c0_i32, %c0_i32_0 : i32, i32
  }
  func.func @transform_4(%arg0: i32) -> (i32, i32) {
    %c0_i32 = arith.constant 0 : i32
    %c0_i32_0 = arith.constant 0 : i32
    %c0_i32_1 = arith.constant 0 : i32
    return %c0_i32, %c0_i32_0 : i32, i32
  }
  func.func @transform_5(%arg0: i32) -> (i32, i32, i32) {
    %c0_i32 = arith.constant 0 : i32
    %c0_i32_0 = arith.constant 0 : i32
    %c0_i32_1 = arith.constant 0 : i32
    return %arg0, %c0_i32, %c0_i32_0 : i32, i32, i32
  }
}

</mosaic_0001>

<bundles_post_ra>
// kernel: tpu_custom_call.1
= control target key start
LH: loop header
LB: loop body
LE: loop exit
PB: predicated region body
PF: predicated region fallthrough
CT: control target
= control target key end

     0   :  { %10 = vsyncpa [#allocation3], 0  ;;  %s753_s0 = inlined_call_operand.vmem [shape: f32[2,4,16], index: 0, kind: input, shape index: {}]   ;;  %s754_s1 = inlined_call_operand.vmem [shape: bf16[4,12], index: 1, kind: input, shape index: {}]   ;;  %s755_s2 = inlined_call_operand.vmem [shape: f32[4,1], index: 2, kind: input, shape index: {}]   ;;  %s756_s3 = inlined_call_operand.vmem [shape: bf16[4,12], index: 3, kind: input, shape index: {}]   ;;  %s757_s4 = inlined_call_operand.vmem [shape: f32[4,1], index: 4, kind: input, shape index: {}]   ;;  %s758_s5 = inlined_call_operand.hbm [shape: f32[2,4,16], index: 5, kind: output, shape index: {}]  }
   0x1   :  { %12 = vsyncpa [#allocation3 + $0x1], 0  ;;  %s621_s18 = smov 0   ;;  %s623_s19 = smov 0  }
   0x2   :  { %s625_s20 = smov 0   ;;  %s627_s21 = smov 0  }
   0x3 LB: > { %s642_s22 = sadd.s32 4294967295, %s583_s21   ;;  %s443_s23 = sadd.s32 4294967294, %s583_s21   ;;  %s583_s21 = sphi %s627_s21, %s764_s21   ;;  %s579_s20 = sphi %s625_s20, %s763_s20   ;;  %s575_s19 = sphi %s623_s19, %s762_s19   ;;  %s571_s18 = sphi %s621_s18, %s761_s18  }
   0x4   : > { %s646_s24 = sadd.s32 1, %s583_s21   ;;  %s135_s25 = sadd.s32 1, %s579_s20 }
   0x5   : > { %s132_s26 = ssub.s32 %s583_s21, %s646_s24  ;;  %p145_p0 = scmp.ne.s32.totalorder %s579_s20, %s575_s19 }
   0x6   : > { %p133_p1 = scmp.eq.s32.totalorder %s132_s26, 0  ;;  %p146_p2 = scmp.eq.s32.totalorder %s642_s22, 1 }
   0x7   : > { %p151_p3 = scmp.ne.s32.totalorder %s575_s19, %s571_s18  ;;  %p152_p4 = scmp.eq.s32.totalorder %s443_s23, 1 }
   0x8   : > { %s657_s27 = scalar_select %p133_p1, %s579_s20, %s135_s25  }
   0x9   : > { %p659_p5 = por %p146_p2, %p145_p0  ;;  %p663_p6 = por %p152_p4, %p151_p3 }
   0xa   : > { %p446_p7 = scmp.ge.s32.totalorder %s583_s21, 1  ;;  %p189_p8 = scmp.lt.s32.totalorder %s583_s21, 3 }
   0xc   : > { %p190_p9 = pnand %p446_p7, %p189_p8 }
   0xd   : > { %p216_p10 = scmp.lt.s32.totalorder (!%p190_p9), %s642_s22, 1  ;;  %v585_v0 = vmov (!%p190_p9), 0.0   ;;  %vm586_vm0 = vmmov (!%p190_p9), 0   ;;  %v239_v1 = vld [vmem:[%s755_s2] sm:$0xf] (!%p190_p9)  ;;  %v587_v3 = vmov (!%p190_p9), 0  }
   0xe   : > { %193 = sbr.rel (%p190_p9) target bundleno = 751 (0x2ef), region = 40  ;;  %459 = vmatprep.subr.bf16.mxu0 (!%p190_p9), %v585_v0  ;;  %465 = vmatprep.subr.bf16.mxu1 (!%p190_p9), %v585_v0  ;;  %s588_s12 = smov (!%p190_p9), 1   ;;  %vm227_vm1 = vcmask (!%p190_p9), 7168   ;;  %vm232_vm2 = vcmask (!%p190_p9), 121856   ;;  %vm236_vm3 = vcmask (!%p190_p9), 1043456   ;;  %vm249_vm4 = vcmask (!%p190_p9), 1045504  }
   0xf   : > { %461 = vmatprep.mubr.msk.bf16.mxu0 (!%p190_p9), %vm586_vm0, %v585_v0  ;;  %467 = vmatprep.mubr.msk.bf16.mxu1 (!%p190_p9), %vm586_vm0, %v585_v0  ;;  %s589_s13 = smov (!%p190_p9), 127   ;;  %v222_v12 = vld [vmem:[%s754_s1] sm:$0x3] (!%p190_p9)  ;;  %vm245_vm5 = vcmask (!%p190_p9), 97280   ;;  %s213_s26 = sand.u32 (!%p190_p9), 1, %s575_s19   ;;  %vm368_vm6 = vcmask (!%p190_p9), 125952  }
  0x10   : > { %515 = vset.pattern.permute.xlu1 (!%p190_p9), %v587_v3  ;;  %516 = vset.pattern.permute.xlu0 (!%p190_p9), %v587_v3  ;;  %v314_v25 = vld [vmem:[%s757_s4] sm:$0xf] (!%p190_p9) }
  0x11   : > { %242 = vperm.xlu1 (!%p190_p9), %515, %v239_v1   ;;  %v300_v34 = vld [vmem:[%s756_s3] sm:$0x3] (!%p190_p9) }
  0x15   : > { %s217_s30 = scalar_select %p216_p10, %s642_s22, 1 }
  0x17   : > { %s448_s6 = sshll.u32 %s217_s30, 2  ;;  %s447_s30 = sshll.u32 %s213_s26, 2 }
  0x18   : > { %s219_s9 = scalar_lea.vmem %s753_s0, %s448_s6  ;;  %s452_s6 = sshll.u32 %s642_s22, 6 }
  0x19   : > { %v677_v2 = vld [vmem:[%s219_s9] sm:$0xf]  ;;  %s215_s7 = scalar_lea.vmem [#allocation2], %s447_s30  ;;  %s711_s11 = scalar_lea.hbm %s758_s5, %s452_s6 }
  0x1a   : > { %224 = vrot.lane.b32.xlu0 %v677_v2, %s588_s12  ;;  %v234_v5 = vrot.slane %v677_v2, 4  ;;  %s384_s8 = sshll.u32 %s215_s7, 4  ;;  %s713_s8 = int_to_ptr.vmem [resolvable:$true] %s384_s8 }
  0x1b   : > { %s521_s22 = scalar_lea.vmem %s713_s8, 64 }
  0x1c   : > { %p522_p11 = scmp.ne.s32.totalorder %s713_s8, %s521_s22 }
  0x1e   : > { %229 = vrot.lane.b32.xlu0 %v677_v2, %s589_s13  ;;  %p523_p12 = pnand %p522_p11, %p659_p5 }
  0x20   : > { %p524_p13 = pneg %p523_p12 }
  0x8c   : > { %v225_v4 = vpop.permute.xlu0 %224 }
  0x8d   : > { %v228_v6 = vsel %vm227_vm1, 0.0, %v225_v4 }
  0x8e   : > { %v237_v9 = vsel %vm236_vm3, %v228_v6, %v234_v5 }
  0x90   : > { %v230_v7 = vpop.permute.xlu0 %229  ;;  %v243_v13 = vpop.permute.xlu1 %242 }
  0x91   : > { %v233_v8 = vsel %vm232_vm2, %v230_v7, 0.0 }
  0x92   : > { %v238_v10 = vpack.c.bf16 %v233_v8, %v237_v9 }
  0x94   : > { %v251_v11 = vsel %vm249_vm4, %v238_v10, 0 }
  0x95   : > { %460 = vmatpush3.bf16.msra.mxu0 %v251_v11 }
  0x98   : > { %462 = vmatmul.mubr.msk.bf16.vlgmr.msra.gmra.mrb[0].mxu0 %vm245_vm5, %v222_v12 }
 0x16b   : > { %v287_v14 = vpop.f32.mrb[0].mxu0 }
 0x16c   : > { %v288_v15 = vadd.f32 %v287_v14, %v243_v13  ;;  %v463_v16 = vpop.f32.mrb[1].mxu0 }
 0x16d   : > { %v290_v17 = vpop.f32.mrb[2].mxu0 }
 0x16e   : > { %v293_v18 = vsub.f32 0.0, %v288_v15  ;;  %v464_v19 = vpop.f32.mrb[3].mxu0 }
 0x170   : > { %v294_v20 = vmul.f32 1.442695, %v293_v18 }
 0x172   : > { %517 = vpow2.f32 %v294_v20 }
 0x17c   : > { %v518_v21 = vpop.eup %517 }
 0x17d   : > { %v296_v22 = vadd.f32 1.0, %v518_v21 }
 0x17f   : > { %519 = vrcp.f32 %v296_v22 }
 0x189   : > { %v520_v23 = vpop.eup %519 }
 0x18a   : > { %v299_v24 = vmul.f32 %v520_v23, %v288_v15 }
 0x18c   : > { %306 = vrot.lane.b32.xlu0 %v299_v24, %s589_s13  ;;  %302 = vrot.lane.b32.xlu1 %v299_v24, %s588_s12  ;;  %v310_v26 = vrot.slane %v299_v24, 4  ;;  %s371_s12 = scalar_lea.sflag [#allocation3], %s213_s26  ;;  %s590_s13 = smov [#allocation2]  }
 0x18d   : > { %s525_s14 = sshll.u32 %s590_s13, 4  ;;  %s526_s14 = int_to_ptr.vmem [resolvable:$false] %s525_s14 }
 0x18e   : > { %s527_s15 = scalar_lea.vmem %s526_s14, 128  ;;  %p528_p0 = scmp.lt.s32.totalorder %s713_s8, %s526_s14 }
 0x18f   : > { %p529_p1 = scmp.lt.s32.totalorder %s527_s15, %s521_s22 }
 0x190   : > { %317 = vperm.xlu1 %515, %v314_v25  }
 0x191   : > { %p530_p2 = por %p529_p1, %p528_p0 }
 0x193   : > { %p531_p3 = pnand %p530_p2, %p524_p13 }
 0x1fe   : > { %v307_v27 = vpop.permute.xlu0 %306  ;;  %v303_v28 = vpop.permute.xlu1 %302 }
 0x1ff   : > { %v309_v29 = vsel %vm232_vm2, %v307_v27, 0.0  ;;  %v305_v30 = vsel %vm227_vm1, 0.0, %v303_v28 }
 0x200   : > { %v312_v31 = vsel %vm236_vm3, %v305_v30, %v310_v26 }
 0x201   : > { %v313_v32 = vpack.c.bf16 %v309_v29, %v312_v31 }
 0x203   : > { %v324_v33 = vsel %vm249_vm4, %v313_v32, 0 }
 0x204   : > { %466 = vmatpush3.bf16.msra.mxu1 %v324_v33 }
 0x207   : > { %468 = vmatmul.mubr.msk.bf16.vlgmr.msra.gmra.mrb[0].mxu1 %vm245_vm5, %v300_v34 }
 0x20f   : > { %v318_v35 = vpop.permute.xlu1 %317 }
 0x2da   : > { %v360_v36 = vpop.f32.mrb[0].mxu1 }
 0x2db   : > { %v361_v37 = vadd.f32 %v360_v36, %v318_v35  ;;  %v469_v38 = vpop.f32.mrb[1].mxu1 }
 0x2dc   : > { %v363_v39 = vpop.f32.mrb[2].mxu1 }
 0x2dd   : > { %v366_v40 = vadd.f32 %v361_v37, %v677_v2  ;;  %v470_v41 = vpop.f32.mrb[3].mxu1 }
 0x2df   : > { %v367_v42 = vmax.f32 %v366_v40, 0.0 }
 0x2e1   : > { %369 = vst.msk [vmem:[%s215_s7] sm:$0xf] %vm368_vm6, %v367_v42 }
 0x2e2   : > { %534 = shalt.err (!%p531_p3)
}
 0x2e3   : > { %s535_s16 = scalar_lea.hbm %s711_s11, 64  ;;  %s539_s25 = scalar_lea.hbm %s758_s5, 128 }
 0x2e4   : > { %p536_p4 = scmp.ne.s32.totalorder %s711_s11, %s535_s16  ;;  %p540_p9 = scmp.lt.u32.totalorder %s711_s11, %s758_s5 }
 0x2e5   : > { %p541_p10 = scmp.lt.u32.totalorder %s539_s25, %s535_s16  ;;  %p543_p12 = scmp.lt.u32.totalorder %s535_s16, %s711_s11 }
 0x2e6   : > { %p537_p7 = pnand %p536_p4, %p659_p5 }
 0x2e7   : > { %p542_p11 = por %p541_p10, %p540_p9 }
 0x2e8   : > { %p538_p8 = pneg %p537_p7 }
 0x2e9   : > { %p544_p13 = por %p543_p12, %p542_p11 }
 0x2eb   : > { %p545_p0 = pnand %p544_p13, %p538_p8 }
 0x2ed   : > { %548 = shalt.err (!%p545_p0)
}
 0x2ee   : > { %471 = dma.vmem_to_hbm [thread:$0]  (%p659_p5), %s713_s8, 64, %s711_s11, %s371_s12  }
 0x2ef PF: > { %p477_p1 = scmp.ge.s32.totalorder %s583_s21, 2  ;;  %s396_s6 = sand.u32 1, %s571_s18  }
 0x2f0   : > { %s397_s7 = scalar_lea.sflag [#allocation3], %s396_s6 }
 0x2f1   : > { %p474_p2 = pnand %p477_p1, %p663_p6 }
 0x2f3   : > { %566 = dma.done.wait (!%p474_p2), %s397_s7, 64  }
 0x2f4   : > { %568 = vsyncadd (!%p474_p2), %s397_s7, 4294967232  ;;  %p15_p3 = scmp.ge.s32.totalorder %s646_s24, 4   ;;  %s761_s18 = smov %s575_s19 }
 0x2f5   : > { %s762_s19 = smov %s579_s20  ;;  %s763_s20 = smov %s657_s27 }
 0x2f6   : > { %s764_s21 = smov %s646_s24  ;;  %17 = sbr.rel (!%p15_p3) target bundleno = 3 (0x3), region = 75 }
 0x2fd   :  { %402 = vsyncpa [#allocation3], 1 }
 0x2fe   :  { %404 = vsyncpa [#allocation3 + $0x1], 1 }

</bundles_post_ra>
